<compile_context>
chip_gen: v5e
topology: v5e:2x2
jax: 0.10.0
libtpu: 0.0.40
codegen_flags: <defaults>
</compile_context>

<pallas_src>
import math

import jax
import jax.numpy as jnp
from jax.experimental import pallas as pl
from jax.experimental.pallas import tpu as pltpu


_MIB = 1024 * 1024


def _device_profile():
    """Return (block_budget_bytes, two_tensorcores) for the local TPU."""
    kind = ""
    try:
        kind = jax.devices()[0].device_kind.lower()
    except Exception:  # defensive: defaults below are safe on every generation
        pass
    is_v7 = ("v7" in kind) or ("7x" in kind)
    # Chips whose Pallas grid shards "parallel" axes across two TensorCores.
    two_core = is_v7 or ("v4" in kind) or ("v5p" in kind)
    # v7x: per-step overhead is a larger fraction of each (fast-HBM) step, so
    # use bigger blocks -- still bounded for its 64 MiB physical VMEM.
    block_budget = (6 if is_v7 else 4) * _MIB
    return block_budget, two_core


def _plan_tiles(NC, HW, C, itemsize, block_budget, two_core):
    """Pick (row, col) tiles for the flattened (NC, HW) slab.

    Invariants:
      * col is a multiple of 128 or equal to HW (lane constraint; ragged last
        blocks are masked by Pallas, so HW need not be a multiple of 128).
      * row is a multiple of lcm(C, sublane_mult) or equal to NC, so every row
        block re-uses the same per-channel constant pattern and sublane tiles
        stay dense for sub-32-bit dtypes.
      * row * col * itemsize <= block_budget (soft), row <= 4096 so the
        resident f32 constant columns stay small in VMEM.
    """
    lane = 128
    sub = max(8, 32 // itemsize)             # sublane multiple: 8 f32 / 16 bf16 / 32 int8
    period = C * sub // math.gcd(C, sub)     # row-tile channel-pattern period
    row_cap = 4096                           # bounds the resident (row,1) constants

    row_unit = NC if NC <= period else period
    cols_budget = max(lane, (block_budget // (row_unit * itemsize)) // lane * lane)
    col = HW if HW <= cols_budget else cols_budget

    rows_budget = max(1, block_budget // (col * itemsize))
    if NC <= period or NC <= min(rows_budget, row_cap):
        row = NC
    else:
        row = max(period, (min(rows_budget, row_cap) // period) * period)

    # 2-TensorCore chips only: guarantee >= 2 grid blocks so both cores get
    # work; prefer splitting the lane axis so row tiles stay full-size.
    if two_core and pl.cdiv(NC, row) * pl.cdiv(HW, col) < 2:
        half_col = (col // 2) // lane * lane
        if half_col >= lane:
            col = half_col
        elif NC >= 2 * period:
            row = pl.cdiv(pl.cdiv(NC, 2), period) * period

    return row, col


def _normalize_kernel(m_ref, s_ref, x_ref, o_ref):
    # m_ref / s_ref: (row, 1) f32 per-row mean and 1/std, resident in VMEM for
    #                the whole grid (same channel pattern for every row block).
    # x_ref / o_ref: (row, col) streamed data tiles.
    x = x_ref[...].astype(jnp.float32)
    o_ref[...] = ((x - m_ref[...]) * s_ref[...]).astype(o_ref.dtype)


def normalize(x, mean, std, *, donate_x=False):
    """Pallas equivalent of Normalize.forward for NCHW float input.

    x:    (N, C, H, W) array (float dtype expected, as in the PyTorch module)
    mean: (C,) per-channel mean
    std:  (C,) per-channel std
    donate_x: if the caller donates x, alias the data input to the output to
              avoid allocating a second full-size HBM buffer.
    """
    N, C, H, W = x.shape
    NC, HW = N * C, H * W
    itemsize = jnp.dtype(x.dtype).itemsize

    # Match PyTorch's `.type_as(x)`, then keep the arithmetic in f32 vregs.
    # TODO(synk): integer image dtypes (which PyTorch would truncate via
    # type_as) are not specially handled; float inputs are the intended use.
    mean_f = jnp.asarray(mean).reshape(C).astype(x.dtype).astype(jnp.float32)
    std_f = jnp.asarray(std).reshape(C).astype(x.dtype).astype(jnp.float32)
    inv_f = 1.0 / std_f  # C scalar divides, outside the hot loop

    block_budget, two_core = _device_profile()
    row, col = _plan_tiles(NC, HW, C, itemsize, block_budget, two_core)
    grid = (pl.cdiv(NC, row), pl.cdiv(HW, col))

    # One (row, 1) channel pattern, valid for every row block (row % C == 0).
    reps = row // C
    mean_col = jnp.tile(mean_f, reps).reshape(row, 1)
    inv_col = jnp.tile(inv_f, reps).reshape(row, 1)

    x2 = x.reshape(NC, HW)

    # VMEM bound: double-buffered (in + out) data tiles + the two resident f32
    # constant columns (lane-padded to 128) + compiler headroom.
    data_vmem = 2 * 2 * row * col * itemsize
    const_vmem = 2 * ((row + 7) // 8 * 8) * 128 * 4
    vmem_limit = int(min(56 * _MIB, max(32 * _MIB, data_vmem + const_vmem + 4 * _MIB)))

    extra = {"input_output_aliases": {2: 0}} if donate_x else {}

    out2 = pl.pallas_call(
        _normalize_kernel,
        out_shape=jax.ShapeDtypeStruct((NC, HW), x.dtype),
        grid=grid,
        in_specs=[
            pl.BlockSpec(memory_space=pltpu.MemorySpace.VMEM),  # mean pattern (whole, resident)
            pl.BlockSpec(memory_space=pltpu.MemorySpace.VMEM),  # 1/std pattern (whole, resident)
            pl.BlockSpec((row, col), lambda i, j: (i, j)),      # streamed data
        ],
        out_specs=pl.BlockSpec((row, col), lambda i, j: (i, j)),
        compiler_params=pltpu.CompilerParams(
            dimension_semantics=("parallel", "parallel"),
            vmem_limit_bytes=vmem_limit,
        ),
        **extra,
    )(mean_col, inv_col, x2)

    return out2.reshape(N, C, H, W)


if __name__ == "__main__":
    # Deterministic parameters (ImageNet-style normalization constants).
    mean = jnp.array([0.485, 0.456, 0.406], dtype=jnp.float32)
    std = jnp.array([0.229, 0.224, 0.225], dtype=jnp.float32)

    # Small deterministic input consistent with the module: NCHW with C=3.
    key = jax.random.PRNGKey(0)
    x = jax.random.uniform(key, (2, 3, 16, 16), dtype=jnp.float32)

    out = jax.block_until_ready(normalize(x, mean, std))

    # Reference check in plain JAX (same semantics as the PyTorch module).
    ref = (x - mean.reshape(1, 3, 1, 1)) / std.reshape(1, 3, 1, 1)
    assert out.shape == x.shape and out.dtype == x.dtype
    # Reciprocal-multiply differs from a true divide by <= ~1 ulp.
    assert jnp.allclose(out, ref, atol=1e-5, rtol=1e-5)

    print("KERNEL_OK")
</pallas_src>

<mosaic_0001>
module attributes {stable_mosaic.version = 11 : i64} {
  func.func @_normalize_kernel(%arg0: i32, %arg1: i32, %arg2: memref<6x1xf32, #tpu.memory_space<vmem>>, %arg3: memref<6x1xf32, #tpu.memory_space<vmem>>, %arg4: memref<6x256xf32, #tpu.memory_space<vmem>>, %arg5: memref<6x256xf32, #tpu.memory_space<vmem>>) attributes {dimension_semantics = [#tpu.dimension_semantics<parallel>, #tpu.dimension_semantics<parallel>], iteration_bounds = array<i64: 1, 1>, scalar_prefetch = 0 : i64, scratch_operands = 0 : i64, tpu.core_type = #tpu.core_type<tc>, window_params = [{pipeline_mode = #tpu.pipeline_mode<synchronous>, transform_indices = @transform_0, window_bounds = array<i64: 6, 1>}, {pipeline_mode = #tpu.pipeline_mode<synchronous>, transform_indices = @transform_1, window_bounds = array<i64: 6, 1>}, {transform_indices = @transform_2, window_bounds = array<i64: 6, 256>}, {transform_indices = @transform_3, window_bounds = array<i64: 6, 256>}]} {
    %c0 = arith.constant 0 : index
    %c0_0 = arith.constant 0 : index
    %0 = vector.load %arg4[%c0, %c0_0] : memref<6x256xf32, #tpu.memory_space<vmem>>, vector<6x256xf32>
    %c0_1 = arith.constant 0 : index
    %c0_2 = arith.constant 0 : index
    %1 = vector.load %arg2[%c0_1, %c0_2] : memref<6x1xf32, #tpu.memory_space<vmem>>, vector<6x1xf32>
    %2 = vector.broadcast %1 : vector<6x1xf32> to vector<6x256xf32>
    %3 = arith.subf %0, %2 : vector<6x256xf32>
    %c0_3 = arith.constant 0 : index
    %c0_4 = arith.constant 0 : index
    %4 = vector.load %arg3[%c0_3, %c0_4] : memref<6x1xf32, #tpu.memory_space<vmem>>, vector<6x1xf32>
    %5 = vector.broadcast %4 : vector<6x1xf32> to vector<6x256xf32>
    %6 = arith.mulf %3, %5 : vector<6x256xf32>
    %c0_5 = arith.constant 0 : index
    %c0_6 = arith.constant 0 : index
    %7 = vector.load %arg5[%c0_5, %c0_6] : memref<6x256xf32, #tpu.memory_space<vmem>>, vector<6x256xf32>
    tpu.vector_store %arg5[%c0_5, %c0_6], %6 {strides = array<i32>} : memref<6x256xf32, #tpu.memory_space<vmem>>, vector<6x256xf32>,
    return
  }
  func.func @transform_0(%arg0: i32, %arg1: i32) -> (i32, i32) {
    %c0_i32 = arith.constant 0 : i32
    %c0_i32_0 = arith.constant 0 : i32
    %c0_i32_1 = arith.constant 0 : i32
    return %c0_i32, %c0_i32_0 : i32, i32
  }
  func.func @transform_1(%arg0: i32, %arg1: i32) -> (i32, i32) {
    %c0_i32 = arith.constant 0 : i32
    %c0_i32_0 = arith.constant 0 : i32
    %c0_i32_1 = arith.constant 0 : i32
    return %c0_i32, %c0_i32_0 : i32, i32
  }
  func.func @transform_2(%arg0: i32, %arg1: i32) -> (i32, i32) {
    %c0_i32 = arith.constant 0 : i32
    return %arg0, %arg1 : i32, i32
  }
  func.func @transform_3(%arg0: i32, %arg1: i32) -> (i32, i32) {
    %c0_i32 = arith.constant 0 : i32
    return %arg0, %arg1 : i32, i32
  }
}

</mosaic_0001>

<bundles_post_ra>
// kernel: tpu_custom_call.1
= control target key start
LH: loop header
LB: loop body
LE: loop exit
PB: predicated region body
PF: predicated region fallthrough
CT: control target
= control target key end

     0   :  { %v80_v1 = vmov 0   ;;  %s117_s0 = inlined_call_operand.vmem [shape: f32[6,1], index: 0, kind: input, shape index: {}]   ;;  %s118_s1 = inlined_call_operand.vmem [shape: f32[6,1], index: 1, kind: input, shape index: {}]   ;;  %s119_s2 = inlined_call_operand.vmem [shape: f32[6,256], index: 2, kind: input, shape index: {}]   ;;  %s120_s3 = inlined_call_operand.hbm [shape: f32[6,256], index: 3, kind: output, shape index: {}]  }
   0x1   :  { %v17_v0 = vld [vmem:[%s117_s0] sm:$0x3f]  ;;  %53 = vset.pattern.permute.xlu0 %v80_v1 }
   0x2   :  { %8 = vsyncpa [#allocation3], 0  ;;  %20 = vperm.xlu0 %53, %v17_v0   ;;  %v25_v2 = vld [vmem:[%s118_s1] sm:$0x3f]  ;;  %v16_v5 = vld [vmem:[%s119_s2 + $0x8] sm:$0x3f] }
   0x3   :  { %v15_v4 = vld [vmem:[%s119_s2] sm:$0x3f]  ;;  %s81_s0 = smov [#allocation2]   ;;  %s42_s23 = sshll.u32 %s120_s3, 4  ;;  %s43_s23 = int_to_ptr.hbm [resolvable:$true] %s42_s23 }
   0x4   :  { %s40_s20 = sshll.u32 %s81_s0, 4  ;;  %s41_s20 = int_to_ptr.vmem [resolvable:$true] %s40_s20 }
   0xa   :  { %28 = vperm.xlu0 %53, %v25_v2  }
  0x74   :  { %v21_v3 = vpop.permute.xlu0 %20 }
  0x75   :  { %v23_v6 = vsub.f32 %v15_v4, %v21_v3  ;;  %v24_v7 = vsub.f32 %v16_v5, %v21_v3 }
  0x7c   :  { %v29_v8 = vpop.permute.xlu0 %28 }
  0x7d   :  { %v31_v9 = vmul.f32 %v29_v8, %v23_v6  ;;  %v32_v10 = vmul.f32 %v29_v8, %v24_v7 }
  0x7f   :  { %33 = vst [vmem:[#allocation2] sm:$0x3f] %v31_v9 }
  0x80   :  { %34 = vst [vmem:[#allocation2 + $0x8] sm:$0x3f] %v32_v10 }
  0x81   :  { %45 = dma.vmem_to_hbm [thread:$0]  %s41_s20, 256, %s43_s23, [#allocation3]  }
  0x82   :  { %78 = dma.done.wait [#allocation3], 256  }
  0x83   :  { %79 = vsyncadd [#allocation3], 4294967040 }
  0x84   :  { %50 = vsyncpa [#allocation3], 1 }

</bundles_post_ra>
